<compile_context>
chip_gen: v6e
topology: v6e:2x2x1
jax: 0.10.0
libtpu: 0.0.40
codegen_flags: <defaults>
</compile_context>

<pallas_src>
import functools

import jax
import jax.numpy as jnp
from jax.experimental import pallas as pl
from jax.experimental.pallas import tpu as pltpu

hidden_init = 10  # rows >= hidden_init of the weight are zeroed at init (as in __init__)

_TILE_BYTES = 8 * 1024 * 1024          # target bytes per streamed weight tile
_MIN_SPLIT_TILE_BYTES = 1 * 1024 * 1024  # only split the i axis (megacore) above this
_VMEM_LIMIT_BYTES = 32 * 1024 * 1024   # explicit scoped-VMEM limit (2 x 8 MiB + slack)


# ---------------------------------------------------------------------------
# Kernels
# ---------------------------------------------------------------------------
def _rowsum_full_kernel(w_ref, o_ref):
    # w_ref: (tm, F_in) f32 tile (full rows), o_ref: (tm, 1) f32.
    # No reduction grid axis -> no branches, no accumulator RMW.
    o_ref[...] = jnp.sum(w_ref[...], axis=1, keepdims=True)


def _rowsum_ktiled_kernel(w_ref, o_ref):
    # Fallback for enormous F_in: (tm, tk) tiles, resident (tm, 1) output
    # accumulator across the last ("arbitrary") reduction axis.
    @pl.when(pl.program_id(1) == 0)
    def _init():
        o_ref[...] = jnp.zeros_like(o_ref)

    o_ref[...] += jnp.sum(w_ref[...], axis=1, keepdims=True)


# ---------------------------------------------------------------------------
# Tile selection
# ---------------------------------------------------------------------------
def _aligned_divisors(dim, align):
    """Divisors of `dim` that are multiples of `align`, plus `dim` itself."""
    cands = {dim}
    t = align
    while t < dim:
        if dim % t == 0:
            cands.add(t)
        t += align
    return sorted(cands)


def _select_tm(out_features, tk, tile_bytes):
    """Pick the output-row tile tm (and possibly a padded F_out).

    tm must be a multiple of 8 or the full dim, must divide the (possibly
    padded) F_out, and tm*tk*4 must fit the per-tile byte budget.  When the
    problem is large enough, prefer >= 2 i-tiles so the 'parallel' axis can
    shard across both TensorCores on v7x.
    """
    bytes_per_out_row = 4 * tk

    def feasible(dim):
        return [t for t in _aligned_divisors(dim, 8) if t * bytes_per_out_row <= tile_bytes]

    fo = out_features
    cands = feasible(fo)
    if not cands:
        # No legal tile of F_out fits the budget: zero-pad F_out up to a
        # multiple of 8 (padded rows' outputs are discarded in the wrapper).
        fo = ((out_features + 7) // 8) * 8
        cands = feasible(fo)

    multi = [t for t in cands if fo // t >= 2]
    if multi and max(multi) * bytes_per_out_row >= _MIN_SPLIT_TILE_BYTES:
        return max(multi), fo
    return max(cands), fo


# ---------------------------------------------------------------------------
# Wrapper
# ---------------------------------------------------------------------------
@functools.partial(jax.jit, static_argnames=("tile_bytes",))
def sonia_layer_forward(x, weight, *, tile_bytes=_TILE_BYTES):
    """x: (1, F_in) f32, weight: (F_out, F_in) f32 -> (1, F_out) f32."""
    out_features, in_features = weight.shape
    assert x.shape == (1, in_features)
    tile_bytes = max(int(tile_bytes), 4 * 8 * 128)  # never below one (8,128) f32 tile

    min_rows = min(8, out_features)
    full_row = 4 * in_features * min_rows <= tile_bytes

    if full_row:
        # Preferred path: tk == F_in -> fully contiguous weight rows per DMA,
        # 1-D grid over F_out, no reduction axis at all.
        fk = in_features
        tm, fo = _select_tm(out_features, fk, tile_bytes)
        kernel = _rowsum_full_kernel
        grid = (fo // tm,)
        in_specs = [pl.BlockSpec((tm, fk), lambda i: (i, 0))]
        out_specs = pl.BlockSpec((tm, 1), lambda i: (i, 0))
        dims = ("parallel",)
    else:
        # F_in too large for a full row within the tile budget: tile K.
        tk_max = max(128, (tile_bytes // (4 * min_rows)) // 128 * 128)
        k_cands = [t for t in _aligned_divisors(in_features, 128)
                   if t <= tk_max and t % 128 == 0]
        if k_cands:
            tk, fk = max(k_cands), in_features
        else:
            # No aligned divisor: zero-pad K (zero columns don't change row sums).
            tk = tk_max
            fk = ((in_features + tk - 1) // tk) * tk
        tm, fo = _select_tm(out_features, tk, tile_bytes)
        kernel = _rowsum_ktiled_kernel
        grid = (fo // tm, fk // tk)  # reduction axis last
        in_specs = [pl.BlockSpec((tm, tk), lambda i, k: (i, k))]
        out_specs = pl.BlockSpec((tm, 1), lambda i, k: (i, 0))  # resident accumulator
        dims = ("parallel", "arbitrary")

    w_eff = weight
    if (fo, fk) != (out_features, in_features):
        # Zero padding preserves row sums; only hit on ragged/huge corner cases.
        w_eff = jnp.pad(weight, ((0, fo - out_features), (0, fk - in_features)))

    row_sums = pl.pallas_call(
        kernel,
        out_shape=jax.ShapeDtypeStruct((fo, 1), jnp.float32),
        grid=grid,
        in_specs=in_specs,
        out_specs=out_specs,
        compiler_params=pltpu.CompilerParams(
            dimension_semantics=dims,
            vmem_limit_bytes=_VMEM_LIMIT_BYTES),
        cost_estimate=pl.CostEstimate(
            flops=fo * fk,
            transcendentals=0,
            bytes_accessed=4 * (fo * fk + fo + in_features)),
    )(w_eff)

    # out[0, j] = rowsum(w)[j] - sum(x)   (pow(2)/tanh() in SoniaFunc are no-op
    # annotations).  The subtract + relayout act on only F_out elements.
    return row_sums[:out_features, 0][None, :] - jnp.sum(x, dtype=jnp.float32)


def init_sonia_params(key, input_features, output_features):
    """Deterministic re-creation of SoniaLayer.__init__ parameter shapes."""
    w = jax.random.uniform(
        key, (output_features, input_features), dtype=jnp.float32,
        minval=-0.1, maxval=0.1)
    row_ids = jnp.arange(output_features)[:, None]
    w = jnp.where(row_ids < hidden_init, w, 0.0)      # weight[hidden_init:, :] = 0
    hidden_num = jnp.ones((1,), dtype=jnp.float32) * hidden_init  # unused in forward
    return w, hidden_num


# TODO(synk): SoniaFunc.backward (winner-takes-most masked gradient) is custom
# autograd logic and is not part of the forward pass translated here.

if __name__ == "__main__":
    def _ref(x, w):
        return jnp.sum(w - x, axis=1)[None, :]

    # 1) Small shapes, full-row path (grid = (1,)).
    in1, out1 = 32, 16
    kw, kx = jax.random.split(jax.random.PRNGKey(0))
    w1, _ = init_sonia_params(kw, in1, out1)
    x1 = jax.random.normal(kx, (1, in1), dtype=jnp.float32)
    o1 = jax.block_until_ready(sonia_layer_forward(x1, w1))
    assert o1.shape == (1, out1)
    assert jnp.allclose(o1, _ref(x1, w1), atol=1e-5, rtol=1e-5)

    # 2) Forced-small tile budget to exercise the tiled-K accumulation path
    #    (grid = (2, 2)).
    in2, out2 = 512, 16
    kw2, kx2 = jax.random.split(jax.random.PRNGKey(1))
    w2, _ = init_sonia_params(kw2, in2, out2)
    x2 = jax.random.normal(kx2, (1, in2), dtype=jnp.float32)
    o2 = jax.block_until_ready(sonia_layer_forward(x2, w2, tile_bytes=8192))
    assert o2.shape == (1, out2)
    assert jnp.allclose(o2, _ref(x2, w2), atol=1e-4, rtol=1e-5)

    # 3) Ragged dims with forced tiny budget: exercises zero-padding of both
    #    F_out (to a multiple of 8) and F_in (to a multiple of tk).
    in3, out3 = 300, 10
    kw3, kx3 = jax.random.split(jax.random.PRNGKey(2))
    w3, _ = init_sonia_params(kw3, in3, out3)
    x3 = jax.random.normal(kx3, (1, in3), dtype=jnp.float32)
    o3 = jax.block_until_ready(sonia_layer_forward(x3, w3, tile_bytes=4096))
    assert o3.shape == (1, out3)
    assert jnp.allclose(o3, _ref(x3, w3), atol=1e-4, rtol=1e-5)

    # 4) Same ragged dims, default budget: full-row path with full-dim blocks.
    o4 = jax.block_until_ready(sonia_layer_forward(x3, w3))
    assert o4.shape == (1, out3)
    assert jnp.allclose(o4, _ref(x3, w3), atol=1e-4, rtol=1e-5)

    print("KERNEL_OK")
</pallas_src>

<mosaic_0001>
module attributes {stable_mosaic.version = 11 : i64} {
  func.func @_rowsum_full_kernel(%arg0: i32, %arg1: memref<16x32xf32, #tpu.memory_space<vmem>>, %arg2: memref<16x1xf32, #tpu.memory_space<vmem>>) attributes {dimension_semantics = [#tpu.dimension_semantics<parallel>], iteration_bounds = array<i64: 1>, scalar_prefetch = 0 : i64, scratch_operands = 0 : i64, tpu.core_type = #tpu.core_type<tc>, window_params = [{transform_indices = @transform_0, window_bounds = array<i64: 16, 32>}, {transform_indices = @transform_1, window_bounds = array<i64: 16, 1>}]} {
    %c0 = arith.constant 0 : index
    %c0_0 = arith.constant 0 : index
    %0 = vector.load %arg1[%c0, %c0_0] : memref<16x32xf32, #tpu.memory_space<vmem>>, vector<16x32xf32>
    %cst = arith.constant dense<0.000000e+00> : vector<16xf32>
    %1 = vector.multi_reduction <add>, %0, %cst [1] : vector<16x32xf32> to vector<16xf32>
    %2 = vector.shape_cast %1 : vector<16xf32> to vector<16x1xf32>
    %c0_1 = arith.constant 0 : index
    %c0_2 = arith.constant 0 : index
    %3 = vector.load %arg2[%c0_1, %c0_2] : memref<16x1xf32, #tpu.memory_space<vmem>>, vector<16x1xf32>
    tpu.vector_store %arg2[%c0_1, %c0_2], %2 {strides = array<i32>} : memref<16x1xf32, #tpu.memory_space<vmem>>, vector<16x1xf32>,
    return
  }
  func.func @transform_0(%arg0: i32) -> (i32, i32) {
    %c0_i32 = arith.constant 0 : i32
    %c0_i32_0 = arith.constant 0 : i32
    return %arg0, %c0_i32 : i32, i32
  }
  func.func @transform_1(%arg0: i32) -> (i32, i32) {
    %c0_i32 = arith.constant 0 : i32
    %c0_i32_0 = arith.constant 0 : i32
    return %arg0, %c0_i32 : i32, i32
  }
}

</mosaic_0001>

<bundles_post_ra>
// kernel: sonia_layer_forward.1
= control target key start
LH: loop header
LB: loop body
LE: loop exit
PB: predicated region body
PF: predicated region fallthrough
CT: control target
= control target key end

     0   :  { %6 = vsyncpa [#allocation3], 0  ;;  %s64_s6 = smov [#allocation2]   ;;  %s86_s0 = inlined_call_operand.hbm [shape: f32[16,32], index: 0, kind: input, shape index: {}]   ;;  %s87_s1 = inlined_call_operand.vmem [shape: f32[16,1], index: 1, kind: output, shape index: {}]  }
   0x1   :  { %s12_s7 = sshll.u32 %s64_s6, 4  ;;  %s13_s7 = int_to_ptr.vmem [resolvable:$true] %s12_s7 }
   0x2   :  { %s50_s8 = scalar_lea.vmem %s13_s7, 256  ;;  %p55_p1 = scmp.lt.s32.totalorder %s13_s7, %s13_s7 }
   0x3   :  { %p51_p0 = scmp.ne.s32.totalorder %s13_s7, %s50_s8  ;;  %p56_p2 = scmp.lt.s32.totalorder %s50_s8, %s50_s8 }
   0x5   :  { %p57_p3 = por %p56_p2, %p55_p1 }
   0x7   :  { %p58_p4 = pnand %p57_p3, %p51_p0 }
   0x9   :  { %61 = shalt.err (!%p58_p4)
}
   0xa   :  { %s65_s9 = smov 128   ;;  %s66_s10 = smov 8  }
   0xb   :  { %18 = dma.hbm_to_vmem [thread:$0]  %s86_s0, 256, %s13_s7, [#allocation3], %s65_s9, %s65_s9, %s66_s10  }
   0xc   :  { %62 = dma.done.wait [#allocation3], 256  }
   0xd   :  { %63 = vsyncadd [#allocation3], 4294967040  ;;  %vm24_vm0 = vcmask 261120   ;;  %v22_v0 = vld [vmem:[#allocation2] sm:$0xff]  ;;  %v23_v1 = vld [vmem:[#allocation2 + $0x8] sm:$0xff]  ;;  %vm31_vm1 = vcmask 7168  }
   0xe   :  { %v25_v2 = vsel %vm24_vm0, %v22_v0, 0.0  ;;  %v28_v3 = vsel %vm24_vm0, %v23_v1, 0.0 }
   0xf   :  { %26 = vadd.xlane.f32.xlu0 %v25_v2 }
  0x13   :  { %29 = vadd.xlane.f32.xlu0 %v28_v3 }
  0x98   :  { %v27_v4 = vpop.xlane.xlu0 %26 }
  0x99   :  { %32 = vst.msk [vmem:[%s87_s1] sm:$0xff] %vm31_vm1, %v27_v4 }
  0x9c   :  { %v30_v5 = vpop.xlane.xlu0 %29 }
  0x9d   :  { %33 = vst.msk [vmem:[%s87_s1 + $0x8] sm:$0xff] %vm31_vm1, %v30_v5 }
  0x9e   :  { %38 = vsyncpa [#allocation3], 1 }

</bundles_post_ra>
